<compile_context>
chip_gen: v5e
topology: v5e:2x2
jax: 0.10.0
libtpu: 0.0.40
codegen_flags: <defaults>
</compile_context>

<pallas_src>
import jax
import jax.numpy as jnp
from jax.experimental import pallas as pl
from jax.experimental.pallas import tpu as pltpu

MAX_PAD = 7          # = max dilation, shared padding for all branches
DIL_RATES = (3, 5, 7)


def _round_up(x, m):
    return ((x + m - 1) // m) * m


def _tap_offsets():
    """28 static (row, col) offsets into the MAX_PAD-padded input."""
    offs = [(MAX_PAD, MAX_PAD)]                      # 1x1 conv center
    for d in DIL_RATES:
        for ki in range(3):
            for kj in range(3):
                offs.append((MAX_PAD - d + d * ki, MAX_PAD - d + d * kj))
    return offs


def _pack_weights(w1, w3, w5, w7):
    """Build the (28*Cin, 4*Cout) combined weight.

    Each tap's Cin-row block feeds only its own branch's Cout-column slice:
      rows [0:Cin]            -> cols [0:Cout]       (1x1 conv)
      rows for dilation-3 tap -> cols [Cout:2*Cout]
      rows for dilation-5 tap -> cols [2*Cout:3*Cout]
      rows for dilation-7 tap -> cols [3*Cout:4*Cout]
    """
    Cin, Cout = w1.shape
    K, N = 28 * Cin, 4 * Cout
    wc = jnp.zeros((K, N), w1.dtype)
    wc = wc.at[0:Cin, 0:Cout].set(w1)
    tap = 1
    for bi, w in enumerate((w3, w5, w7)):
        for ki in range(3):
            for kj in range(3):
                wc = wc.at[tap * Cin:(tap + 1) * Cin,
                           (bi + 1) * Cout:(bi + 2) * Cout].set(w[ki, kj])
                tap += 1
    return wc


def cpfe_matmul_kernel(x_ref, w_ref, o_ref):
    # x_ref: (TM, K)  bf16 im2col-packed input rows (K = 28*Cin, lane-dense)
    # w_ref: (K, N)   bf16 combined tap weights (N = 4*Cout = 128, lane-dense)
    # o_ref: (TM, N)  f32 fused conv outputs for all 4 branches, ReLU applied
    acc = jnp.dot(x_ref[...], w_ref[...], preferred_element_type=jnp.float32)
    o_ref[...] = jnp.maximum(acc, 0.0).astype(o_ref.dtype)


def _choose_row_tile(M):
    """Pick the row tile TM and step count for the (M, K) x (K, 128) grid."""
    # <= 2048 rows/block keeps the double-buffered footprint at a few MiB (inside
    # v5e's 16 MiB scoped-VMEM default, v7x's 32 MiB scoped / 64 MiB physical),
    # while >= ~512 rows keeps the ~0.35 us per-step overhead amortized.
    if M <= 4096:
        tm = min(2048, _round_up(M, 16))
    else:
        # >= 8 steps (>= 4 per TensorCore under megacore) and an even count so
        # both v7x TensorCores get equal work and real double-buffering each.
        n_steps = max(8, pl.cdiv(M, 2048))
        n_steps += n_steps % 2
        tm = _round_up(pl.cdiv(M, n_steps), 16)
    return tm, pl.cdiv(M, tm)


def cpfe_forward(x_nchw, w1, w3, w5, w7, channels_last=False):
    """x_nchw: (B, Cin, H, W) float32. Returns (B, 4*Cout, H, W) float32
    (or (B, H, W, 4*Cout) if channels_last=True)."""
    B, Cin, H, W = x_nchw.shape
    Cout = w1.shape[1]
    N = 4 * Cout
    K = 28 * Cin
    M = B * H * W

    # NCHW -> NHWC (module layout is NCHW), cast to bf16 so the whole packing
    # chain and the kernel's LHS traffic are half-width, then pad once by the
    # max dilation (shared by all taps).
    x_nhwc = jnp.transpose(x_nchw, (0, 2, 3, 1)).astype(jnp.bfloat16)
    x_pad = jnp.pad(x_nhwc, ((0, 0), (MAX_PAD, MAX_PAD), (MAX_PAD, MAX_PAD), (0, 0)))

    # im2col in the wrapper: 28 statically-shifted (B,H,W,Cin) windows packed on
    # the channel axis -> lane-dense (B*H*W, 28*Cin) matmul LHS.
    taps = [x_pad[:, oh:oh + H, ow:ow + W, :] for (oh, ow) in _tap_offsets()]
    x_packed = jnp.concatenate(taps, axis=-1).reshape(M, K)

    wc = _pack_weights(w1, w3, w5, w7).astype(jnp.bfloat16)       # (28*Cin, 128)

    TM, n_steps = _choose_row_tile(M)

    out_flat = pl.pallas_call(
        cpfe_matmul_kernel,
        out_shape=jax.ShapeDtypeStruct((M, N), jnp.float32),
        grid=(n_steps,),
        in_specs=[
            pl.BlockSpec((TM, K), lambda i: (i, 0)),      # row tile, pipelined
            pl.BlockSpec((K, N), lambda i: (0, 0)),       # weights, DMA'd once
        ],
        out_specs=pl.BlockSpec((TM, N), lambda i: (i, 0)),
        compiler_params=pltpu.CompilerParams(
            dimension_semantics=("parallel",),
            # Let XLA fuse the pad/slice/concat producer into the packed-LHS
            # operand where it can (low-effort mitigation of the im2col bytes).
            allow_input_fusion=[True, False],
        ),
    )(x_packed, wc)

    out_nhwc = out_flat.reshape(B, H, W, N)     # layout-free reshape
    if channels_last:
        return out_nhwc
    # NCHW transpose kept only to match the PyTorch module's output layout.
    return jnp.transpose(out_nhwc, (0, 3, 1, 2))


def ref_forward(x_nchw, w1, w3, w5, w7):
    """Plain-JAX f32 reference (mirrors the PyTorch forward) for verification."""
    x = jnp.transpose(x_nchw, (0, 2, 3, 1))
    dn = ("NHWC", "HWIO", "NHWC")
    c1 = jax.lax.conv_general_dilated(
        x, w1.reshape(1, 1, *w1.shape), (1, 1), [(0, 0), (0, 0)],
        dimension_numbers=dn)
    outs = [c1]
    for w, d in ((w3, 3), (w5, 5), (w7, 7)):
        outs.append(jax.lax.conv_general_dilated(
            x, w, (1, 1), [(d, d), (d, d)], rhs_dilation=(d, d),
            dimension_numbers=dn))
    concat = jnp.concatenate(outs, axis=-1)
    return jnp.transpose(jnp.maximum(concat, 0.0), (0, 3, 1, 2))


if __name__ == "__main__":
    # Small correctness-check shapes consistent with the module:
    # B=2, in_channels=4, H=W=16, out_channels=32.
    # NOTE: this size (~15 MFLOP, ~1 MB traffic) is for correctness only — any
    # benchmarking must use production feature-map sizes, where the pipelined
    # grid / bf16 / layout choices actually matter.
    B, Cin, H, W = 2, 4, 16, 16
    Cout = 32

    key = jax.random.PRNGKey(0)
    kx, k1, k3, k5, k7 = jax.random.split(key, 5)

    x = jax.random.normal(kx, (B, Cin, H, W), dtype=jnp.float32)
    # Deterministic synthetic weights in the layouts used by the kernel
    # ((Cin, Cout) for the 1x1 conv, HWIO for the dilated 3x3 convs).
    w1 = 0.1 * jax.random.normal(k1, (Cin, Cout), dtype=jnp.float32)
    w3 = 0.1 * jax.random.normal(k3, (3, 3, Cin, Cout), dtype=jnp.float32)
    w5 = 0.1 * jax.random.normal(k5, (3, 3, Cin, Cout), dtype=jnp.float32)
    w7 = 0.1 * jax.random.normal(k7, (3, 3, Cin, Cout), dtype=jnp.float32)

    fwd = jax.jit(cpfe_forward, static_argnames=("channels_last",))
    y = jax.block_until_ready(fwd(x, w1, w3, w5, w7))
    y_ref = jax.block_until_ready(ref_forward(x, w1, w3, w5, w7))

    assert y.shape == (B, 4 * Cout, H, W), y.shape
    # bf16 LHS/weights (f32 accumulation) vs f32 reference -> loosened tolerance.
    assert jnp.allclose(y, y_ref, atol=3e-2, rtol=3e-2), "mismatch vs reference"

    print("KERNEL_OK")
</pallas_src>

<mosaic_0001>
module attributes {stable_mosaic.version = 11 : i64} {
  func.func @cpfe_matmul_kernel(%arg0: i32, %arg1: memref<512x112xbf16, #tpu.memory_space<vmem>>, %arg2: memref<112x128xbf16, #tpu.memory_space<vmem>>, %arg3: memref<512x128xf32, #tpu.memory_space<vmem>>) attributes {dimension_semantics = [#tpu.dimension_semantics<parallel>], iteration_bounds = array<i64: 1>, scalar_prefetch = 0 : i64, scratch_operands = 0 : i64, tpu.core_type = #tpu.core_type<tc>, window_params = [{transform_indices = @transform_0, window_bounds = array<i64: 512, 112>}, {pipeline_mode = #tpu.pipeline_mode<synchronous>, transform_indices = @transform_1, window_bounds = array<i64: 112, 128>}, {transform_indices = @transform_2, window_bounds = array<i64: 512, 128>}]} {
    %c0 = arith.constant 0 : index
    %c0_0 = arith.constant 0 : index
    %0 = vector.load %arg1[%c0, %c0_0] : memref<512x112xbf16, #tpu.memory_space<vmem>>, vector<512x112xbf16>
    %c0_1 = arith.constant 0 : index
    %c0_2 = arith.constant 0 : index
    %1 = vector.load %arg2[%c0_1, %c0_2] : memref<112x128xbf16, #tpu.memory_space<vmem>>, vector<112x128xbf16>
    %cst = arith.constant dense<0.000000e+00> : vector<512x128xf32>
    %2 = tpu.matmul %0, %1, %cst {dimension_numbers = #tpu.dot_dimension_numbers<[1], [0], [0], [1], [0, 0, 1, 1], [], []>} : vector<512x112xbf16>, vector<112x128xbf16>, vector<512x128xf32> -> vector<512x128xf32>
    %cst_3 = arith.constant 0.000000e+00 : f32
    %3 = vector.broadcast %cst_3 : f32 to vector<512x128xf32>
    %4 = arith.maximumf %2, %3 : vector<512x128xf32>
    %c0_4 = arith.constant 0 : index
    %c0_5 = arith.constant 0 : index
    %5 = vector.load %arg3[%c0_4, %c0_5] : memref<512x128xf32, #tpu.memory_space<vmem>>, vector<512x128xf32>
    tpu.vector_store %arg3[%c0_4, %c0_5], %4 {strides = array<i32>} : memref<512x128xf32, #tpu.memory_space<vmem>>, vector<512x128xf32>,
    return
  }
  func.func @transform_0(%arg0: i32) -> (i32, i32) {
    %c0_i32 = arith.constant 0 : i32
    %c0_i32_0 = arith.constant 0 : i32
    return %arg0, %c0_i32 : i32, i32
  }
  func.func @transform_1(%arg0: i32) -> (i32, i32) {
    %c0_i32 = arith.constant 0 : i32
    %c0_i32_0 = arith.constant 0 : i32
    %c0_i32_1 = arith.constant 0 : i32
    return %c0_i32, %c0_i32_0 : i32, i32
  }
  func.func @transform_2(%arg0: i32) -> (i32, i32) {
    %c0_i32 = arith.constant 0 : i32
    %c0_i32_0 = arith.constant 0 : i32
    return %arg0, %c0_i32 : i32, i32
  }
}

</mosaic_0001>

<bundles_post_ra>
// kernel: cpfe_forward.1
= control target key start
LH: loop header
LB: loop body
LE: loop exit
PB: predicated region body
PF: predicated region fallthrough
CT: control target
= control target key end

     0   :  { %s1152_s0 = inlined_call_operand.vmem [shape: bf16[512,112], index: 0, kind: input, shape index: {}]   ;;  %s1153_s1 = inlined_call_operand.vmem [shape: bf16[112,128], index: 1, kind: input, shape index: {}]   ;;  %s1154_s2 = inlined_call_operand.hbm [shape: f32[512,128], index: 2, kind: output, shape index: {}]  }
   0x1   :  { %v931_v0 = vld [vmem:[%s1153_s1 + $0x30] sm:$0xff]  ;;  %v930_v1 = vld [vmem:[%s1153_s1 + $0x28] sm:$0xff] }
   0x2   :  { %391 = vmatpush.bf16.msra.mxu0 %v931_v0  ;;  %932 = vmatpush.bf16.msra.mxu1 %v931_v0 }
   0x3   :  { %933 = vmatpush.bf16.msra.mxu2 %v931_v0  ;;  %934 = vmatpush.bf16.msra.mxu3 %v931_v0 }
   0x4   :  { %7 = vsyncpa [#allocation3], 0  ;;  %v929_v2 = vld [vmem:[%s1153_s1 + $0x20] sm:$0xff]  ;;  %v928_v3 = vld [vmem:[%s1153_s1 + $0x18] sm:$0xff]  ;;  %vm293_vm0 = vcmask 916480   ;;  %s693_s3 = sshll.u32 %s1154_s2, 4  ;;  %s694_s3 = int_to_ptr.hbm [resolvable:$true] %s693_s3 }
   0x5   :  { %v927_v4 = vld [vmem:[%s1153_s1 + $0x10] sm:$0xff]  ;;  %v926_v5 = vld [vmem:[%s1153_s1 + $0x8] sm:$0xff]  ;;  %v925_v6 = vld [vmem:[%s1153_s1] sm:$0xff]  ;;  %s983_s4 = smov 128   ;;  %s984_s5 = smov 8  }
   0x6   :  { %392 = vmatpush.bf16.msra.mxu0 %v930_v1  ;;  %935 = vmatpush.bf16.msra.mxu1 %v930_v1  ;;  %v893_v7 = vld [vmem:[%s1152_s0] sm:$0xff]  ;;  %v894_v11 = vld [vmem:[%s1152_s0 + $0x8] sm:$0xff]  ;;  %v895_v15 = vld [vmem:[%s1152_s0 + $0x10] sm:$0xff] }
   0x7   :  { %936 = vmatpush.bf16.msra.mxu2 %v930_v1  ;;  %937 = vmatpush.bf16.msra.mxu3 %v930_v1  ;;  %v901_v8 = vld [vmem:[%s1152_s0 + $0x40] sm:$0xff]  ;;  %v902_v12 = vld [vmem:[%s1152_s0 + $0x48] sm:$0xff]  ;;  %v903_v16 = vld [vmem:[%s1152_s0 + $0x50] sm:$0xff] }
   0x8   :  { %v909_v9 = vld [vmem:[%s1152_s0 + $0x80] sm:$0xff]  ;;  %v910_v13 = vld [vmem:[%s1152_s0 + $0x88] sm:$0xff]  ;;  %v911_v17 = vld [vmem:[%s1152_s0 + $0x90] sm:$0xff] }
   0x9   :  { %v917_v10 = vld [vmem:[%s1152_s0 + $0xc0] sm:$0xff]  ;;  %v918_v14 = vld [vmem:[%s1152_s0 + $0xc8] sm:$0xff]  ;;  %v919_v18 = vld [vmem:[%s1152_s0 + $0xd0] sm:$0xff] }
   0xa   :  { %393 = vmatpush.bf16.msra.mxu0 %v929_v2  ;;  %938 = vmatpush.bf16.msra.mxu1 %v929_v2  ;;  %v896_v19 = vld [vmem:[%s1152_s0 + $0x18] sm:$0xff]  ;;  %v897_v23 = vld [vmem:[%s1152_s0 + $0x20] sm:$0xff]  ;;  %v898_v27 = vld [vmem:[%s1152_s0 + $0x28] sm:$0xff] }
   0xb   :  { %939 = vmatpush.bf16.msra.mxu2 %v929_v2  ;;  %940 = vmatpush.bf16.msra.mxu3 %v929_v2  ;;  %v904_v20 = vld [vmem:[%s1152_s0 + $0x58] sm:$0xff]  ;;  %v905_v24 = vld [vmem:[%s1152_s0 + $0x60] sm:$0xff]  ;;  %v906_v28 = vld [vmem:[%s1152_s0 + $0x68] sm:$0xff] }
   0xc   :  { %v912_v21 = vld [vmem:[%s1152_s0 + $0x98] sm:$0xff]  ;;  %v913_v25 = vld [vmem:[%s1152_s0 + $0xa0] sm:$0xff]  ;;  %v914_v29 = vld [vmem:[%s1152_s0 + $0xa8] sm:$0xff] }
   0xd   :  { %v920_v22 = vld [vmem:[%s1152_s0 + $0xd8] sm:$0xff]  ;;  %v921_v26 = vld [vmem:[%s1152_s0 + $0xe0] sm:$0xff]  ;;  %v922_v30 = vld [vmem:[%s1152_s0 + $0xe8] sm:$0xff] }
   0xe   :  { %394 = vmatpush.bf16.msra.mxu0 %v928_v3  ;;  %941 = vmatpush.bf16.msra.mxu1 %v928_v3  ;;  %v899_v31 = vld [vmem:[%s1152_s0 + $0x30] sm:$0xff]  ;;  %v900_v35 = vld [vmem:[%s1152_s0 + $0x38] sm:$0xff] }
   0xf   :  { %942 = vmatpush.bf16.msra.mxu2 %v928_v3  ;;  %943 = vmatpush.bf16.msra.mxu3 %v928_v3  ;;  %v907_v32 = vld [vmem:[%s1152_s0 + $0x70] sm:$0xff]  ;;  %v908_v36 = vld [vmem:[%s1152_s0 + $0x78] sm:$0xff] }
  0x10   :  { %v915_v33 = vld [vmem:[%s1152_s0 + $0xb0] sm:$0xff]  ;;  %v916_v37 = vld [vmem:[%s1152_s0 + $0xb8] sm:$0xff] }
  0x11   :  { %v923_v34 = vld [vmem:[%s1152_s0 + $0xf0] sm:$0xff]  ;;  %v924_v38 = vld [vmem:[%s1152_s0 + $0xf8] sm:$0xff]  ;;  %s982_s0 = smov [#allocation2]  }
  0x12   :  { %395 = vmatpush.bf16.msra.mxu0 %v927_v4  ;;  %944 = vmatpush.bf16.msra.mxu1 %v927_v4  ;;  %s691_s29 = sshll.u32 %s982_s0, 4  ;;  %s692_s29 = int_to_ptr.vmem [resolvable:$true] %s691_s29 }
  0x13   :  { %945 = vmatpush.bf16.msra.mxu2 %v927_v4  ;;  %946 = vmatpush.bf16.msra.mxu3 %v927_v4 }
  0x16   :  { %396 = vmatpush.bf16.msra.mxu0 %v926_v5  ;;  %947 = vmatpush.bf16.msra.mxu1 %v926_v5 }
  0x17   :  { %948 = vmatpush.bf16.msra.mxu2 %v926_v5  ;;  %949 = vmatpush.bf16.msra.mxu3 %v926_v5 }
  0x1a   :  { %397 = vmatpush.bf16.msra.mxu0 %v925_v6  ;;  %950 = vmatpush.bf16.msra.mxu1 %v925_v6 }
  0x1b   :  { %951 = vmatpush.bf16.msra.mxu2 %v925_v6  ;;  %952 = vmatpush.bf16.msra.mxu3 %v925_v6 }
  0x1d   :  { %861 = vmatmul.msk.bf16.vlgmr.msra.gmra.mxu0 %vm293_vm0, %v893_v7  ;;  %869 = vmatmul.msk.bf16.vlgmr.msra.gmra.mxu1 %vm293_vm0, %v901_v8 }
  0x1e   :  { %877 = vmatmul.msk.bf16.vlgmr.msra.gmra.mxu2 %vm293_vm0, %v909_v9  ;;  %885 = vmatmul.msk.bf16.vlgmr.msra.gmra.mxu3 %vm293_vm0, %v917_v10 }
  0x2d   :  { %862 = vmatmul.msk.bf16.gmra.mxu0 %vm293_vm0, %v894_v11  ;;  %870 = vmatmul.msk.bf16.gmra.mxu1 %vm293_vm0, %v902_v12 }
  0x2e   :  { %878 = vmatmul.msk.bf16.gmra.mxu2 %vm293_vm0, %v910_v13  ;;  %886 = vmatmul.msk.bf16.gmra.mxu3 %vm293_vm0, %v918_v14 }
  0x3d   :  { %863 = vmatmul.msk.bf16.gmra.mxu0 %vm293_vm0, %v895_v15  ;;  %871 = vmatmul.msk.bf16.gmra.mxu1 %vm293_vm0, %v903_v16 }
  0x3e   :  { %879 = vmatmul.msk.bf16.gmra.mxu2 %vm293_vm0, %v911_v17  ;;  %887 = vmatmul.msk.bf16.gmra.mxu3 %vm293_vm0, %v919_v18 }
  0x4d   :  { %864 = vmatmul.msk.bf16.gmra.mxu0 %vm293_vm0, %v896_v19  ;;  %872 = vmatmul.msk.bf16.gmra.mxu1 %vm293_vm0, %v904_v20 }
  0x4e   :  { %880 = vmatmul.msk.bf16.gmra.mxu2 %vm293_vm0, %v912_v21  ;;  %888 = vmatmul.msk.bf16.gmra.mxu3 %vm293_vm0, %v920_v22 }
  0x5d   :  { %865 = vmatmul.msk.bf16.gmra.mxu0 %vm293_vm0, %v897_v23  ;;  %873 = vmatmul.msk.bf16.gmra.mxu1 %vm293_vm0, %v905_v24 }
  0x5e   :  { %881 = vmatmul.msk.bf16.gmra.mxu2 %vm293_vm0, %v913_v25  ;;  %889 = vmatmul.msk.bf16.gmra.mxu3 %vm293_vm0, %v921_v26 }
  0x6d   :  { %866 = vmatmul.msk.bf16.gmra.mxu0 %vm293_vm0, %v898_v27  ;;  %874 = vmatmul.msk.bf16.gmra.mxu1 %vm293_vm0, %v906_v28 }
  0x6e   :  { %882 = vmatmul.msk.bf16.gmra.mxu2 %vm293_vm0, %v914_v29  ;;  %890 = vmatmul.msk.bf16.gmra.mxu3 %vm293_vm0, %v922_v30 }
  0x7d   :  { %867 = vmatmul.msk.bf16.gmra.mxu0 %vm293_vm0, %v899_v31  ;;  %875 = vmatmul.msk.bf16.gmra.mxu1 %vm293_vm0, %v907_v32 }
  0x7e   :  { %883 = vmatmul.msk.bf16.gmra.mxu2 %vm293_vm0, %v915_v33  ;;  %891 = vmatmul.msk.bf16.gmra.mxu3 %vm293_vm0, %v923_v34 }
  0x8d   :  { %868 = vmatmul.msk.bf16.gmra.mxu0 %vm293_vm0, %v900_v35  ;;  %876 = vmatmul.msk.bf16.gmra.mxu1 %vm293_vm0, %v908_v36 }
  0x8e   :  { %884 = vmatmul.msk.bf16.gmra.mxu2 %vm293_vm0, %v916_v37  ;;  %892 = vmatmul.msk.bf16.gmra.mxu3 %vm293_vm0, %v924_v38 }
  0x9a   :  { %v399_v39 = vpop.f32.mrf.mxu0  ;;  %v439_v40 = vpop.f32.mrf.mxu1 }
  0x9b   :  { %v559_v41 = vmax.f32 %v399_v39, 0.0  ;;  %v575_v42 = vmax.f32 %v439_v40, 0.0 }
  0x9d   :  { %623 = vst [vmem:[#allocation2] sm:$0xff] %v559_v41 }
  0x9e   :  { %639 = vst [vmem:[#allocation2 + $0x80] sm:$0xff] %v575_v42 }
  0xa1   :  { %v479_v43 = vpop.f32.mrf.mxu2  ;;  %v519_v44 = vpop.f32.mrf.mxu3 }
  0xa2   :  { %v591_v45 = vmax.f32 %v479_v43, 0.0  ;;  %v607_v46 = vmax.f32 %v519_v44, 0.0  ;;  %v401_v47 = vpop.f32.mrf.mxu0  ;;  %v441_v48 = vpop.f32.mrf.mxu1 }
  0xa3   :  { %v560_v49 = vmax.f32 %v401_v47, 0.0  ;;  %v576_v50 = vmax.f32 %v441_v48, 0.0 }
  0xa4   :  { %655 = vst [vmem:[#allocation2 + $0x100] sm:$0xff] %v591_v45 }
  0xa5   :  { %671 = vst [vmem:[#allocation2 + $0x180] sm:$0xff] %v607_v46 }
  0xa6   :  { %624 = vst [vmem:[#allocation2 + $0x8] sm:$0xff] %v560_v49 }
  0xa7   :  { %640 = vst [vmem:[#allocation2 + $0x88] sm:$0xff] %v576_v50 }
  0xa9   :  { %v481_v51 = vpop.f32.mrf.mxu2  ;;  %v521_v52 = vpop.f32.mrf.mxu3 }
  0xaa   :  { %v592_v53 = vmax.f32 %v481_v51, 0.0  ;;  %v608_v54 = vmax.f32 %v521_v52, 0.0  ;;  %v404_v55 = vpop.f32.mrf.mxu0  ;;  %v444_v56 = vpop.f32.mrf.mxu1 }
  0xab   :  { %v561_v57 = vmax.f32 %v404_v55, 0.0  ;;  %v577_v58 = vmax.f32 %v444_v56, 0.0 }
  0xac   :  { %656 = vst [vmem:[#allocation2 + $0x108] sm:$0xff] %v592_v53 }
  0xad   :  { %672 = vst [vmem:[#allocation2 + $0x188] sm:$0xff] %v608_v54 }
  0xae   :  { %625 = vst [vmem:[#allocation2 + $0x10] sm:$0xff] %v561_v57 }
  0xaf   :  { %641 = vst [vmem:[#allocation2 + $0x90] sm:$0xff] %v577_v58 }
  0xb1   :  { %v484_v59 = vpop.f32.mrf.mxu2  ;;  %v524_v60 = vpop.f32.mrf.mxu3 }
  0xb2   :  { %v593_v61 = vmax.f32 %v484_v59, 0.0  ;;  %v609_v62 = vmax.f32 %v524_v60, 0.0  ;;  %v406_v63 = vpop.f32.mrf.mxu0  ;;  %v446_v0 = vpop.f32.mrf.mxu1 }
  0xb3   :  { %v562_v1 = vmax.f32 %v406_v63, 0.0  ;;  %v578_v2 = vmax.f32 %v446_v0, 0.0 }
  0xb4   :  { %657 = vst [vmem:[#allocation2 + $0x110] sm:$0xff] %v593_v61 }
  0xb5   :  { %673 = vst [vmem:[#allocation2 + $0x190] sm:$0xff] %v609_v62 }
  0xb6   :  { %626 = vst [vmem:[#allocation2 + $0x18] sm:$0xff] %v562_v1 }
  0xb7   :  { %642 = vst [vmem:[#allocation2 + $0x98] sm:$0xff] %v578_v2 }
  0xb9   :  { %v486_v3 = vpop.f32.mrf.mxu2  ;;  %v526_v4 = vpop.f32.mrf.mxu3 }
  0xba   :  { %v594_v5 = vmax.f32 %v486_v3, 0.0  ;;  %v610_v6 = vmax.f32 %v526_v4, 0.0  ;;  %v409_v7 = vpop.f32.mrf.mxu0  ;;  %v449_v8 = vpop.f32.mrf.mxu1 }
  0xbb   :  { %v563_v9 = vmax.f32 %v409_v7, 0.0  ;;  %v579_v10 = vmax.f32 %v449_v8, 0.0 }
  0xbc   :  { %658 = vst [vmem:[#allocation2 + $0x118] sm:$0xff] %v594_v5 }
  0xbd   :  { %674 = vst [vmem:[#allocation2 + $0x198] sm:$0xff] %v610_v6 }
  0xbe   :  { %627 = vst [vmem:[#allocation2 + $0x20] sm:$0xff] %v563_v9 }
  0xbf   :  { %643 = vst [vmem:[#allocation2 + $0xa0] sm:$0xff] %v579_v10 }
  0xc1   :  { %v489_v11 = vpop.f32.mrf.mxu2  ;;  %v529_v12 = vpop.f32.mrf.mxu3 }
  0xc2   :  { %v595_v13 = vmax.f32 %v489_v11, 0.0  ;;  %v611_v14 = vmax.f32 %v529_v12, 0.0  ;;  %v411_v15 = vpop.f32.mrf.mxu0  ;;  %v451_v16 = vpop.f32.mrf.mxu1 }
  0xc3   :  { %v564_v17 = vmax.f32 %v411_v15, 0.0  ;;  %v580_v18 = vmax.f32 %v451_v16, 0.0 }
  0xc4   :  { %659 = vst [vmem:[#allocation2 + $0x120] sm:$0xff] %v595_v13 }
  0xc5   :  { %675 = vst [vmem:[#allocation2 + $0x1a0] sm:$0xff] %v611_v14 }
  0xc6   :  { %628 = vst [vmem:[#allocation2 + $0x28] sm:$0xff] %v564_v17 }
  0xc7   :  { %644 = vst [vmem:[#allocation2 + $0xa8] sm:$0xff] %v580_v18 }
  0xc9   :  { %v491_v19 = vpop.f32.mrf.mxu2  ;;  %v531_v20 = vpop.f32.mrf.mxu3 }
  0xca   :  { %v596_v21 = vmax.f32 %v491_v19, 0.0  ;;  %v612_v22 = vmax.f32 %v531_v20, 0.0  ;;  %v414_v23 = vpop.f32.mrf.mxu0  ;;  %v454_v24 = vpop.f32.mrf.mxu1 }
  0xcb   :  { %v565_v25 = vmax.f32 %v414_v23, 0.0  ;;  %v581_v26 = vmax.f32 %v454_v24, 0.0 }
  0xcc   :  { %660 = vst [vmem:[#allocation2 + $0x128] sm:$0xff] %v596_v21 }
  0xcd   :  { %676 = vst [vmem:[#allocation2 + $0x1a8] sm:$0xff] %v612_v22 }
  0xce   :  { %629 = vst [vmem:[#allocation2 + $0x30] sm:$0xff] %v565_v25 }
  0xcf   :  { %645 = vst [vmem:[#allocation2 + $0xb0] sm:$0xff] %v581_v26 }
  0xd1   :  { %v494_v27 = vpop.f32.mrf.mxu2  ;;  %v534_v28 = vpop.f32.mrf.mxu3 }
  0xd2   :  { %v597_v29 = vmax.f32 %v494_v27, 0.0  ;;  %v613_v30 = vmax.f32 %v534_v28, 0.0  ;;  %v416_v31 = vpop.f32.mrf.mxu0  ;;  %v456_v32 = vpop.f32.mrf.mxu1 }
  0xd3   :  { %v566_v33 = vmax.f32 %v416_v31, 0.0  ;;  %v582_v34 = vmax.f32 %v456_v32, 0.0 }
  0xd4   :  { %661 = vst [vmem:[#allocation2 + $0x130] sm:$0xff] %v597_v29 }
  0xd5   :  { %677 = vst [vmem:[#allocation2 + $0x1b0] sm:$0xff] %v613_v30 }
  0xd6   :  { %630 = vst [vmem:[#allocation2 + $0x38] sm:$0xff] %v566_v33 }
  0xd7   :  { %646 = vst [vmem:[#allocation2 + $0xb8] sm:$0xff] %v582_v34 }
  0xd9   :  { %v496_v35 = vpop.f32.mrf.mxu2  ;;  %v536_v36 = vpop.f32.mrf.mxu3 }
  0xda   :  { %v598_v37 = vmax.f32 %v496_v35, 0.0  ;;  %v614_v38 = vmax.f32 %v536_v36, 0.0  ;;  %v419_v39 = vpop.f32.mrf.mxu0  ;;  %v459_v40 = vpop.f32.mrf.mxu1 }
  0xdb   :  { %v567_v41 = vmax.f32 %v419_v39, 0.0  ;;  %v583_v42 = vmax.f32 %v459_v40, 0.0 }
  0xdc   :  { %662 = vst [vmem:[#allocation2 + $0x138] sm:$0xff] %v598_v37 }
  0xdd   :  { %678 = vst [vmem:[#allocation2 + $0x1b8] sm:$0xff] %v614_v38 }
  0xde   :  { %631 = vst [vmem:[#allocation2 + $0x40] sm:$0xff] %v567_v41 }
  0xdf   :  { %647 = vst [vmem:[#allocation2 + $0xc0] sm:$0xff] %v583_v42 }
  0xe1   :  { %v499_v43 = vpop.f32.mrf.mxu2  ;;  %v539_v44 = vpop.f32.mrf.mxu3 }
  0xe2   :  { %v599_v45 = vmax.f32 %v499_v43, 0.0  ;;  %v615_v46 = vmax.f32 %v539_v44, 0.0  ;;  %v421_v47 = vpop.f32.mrf.mxu0  ;;  %v461_v48 = vpop.f32.mrf.mxu1 }
  0xe3   :  { %v568_v49 = vmax.f32 %v421_v47, 0.0  ;;  %v584_v50 = vmax.f32 %v461_v48, 0.0 }
  0xe4   :  { %663 = vst [vmem:[#allocation2 + $0x140] sm:$0xff] %v599_v45 }
  0xe5   :  { %679 = vst [vmem:[#allocation2 + $0x1c0] sm:$0xff] %v615_v46 }
  0xe6   :  { %632 = vst [vmem:[#allocation2 + $0x48] sm:$0xff] %v568_v49 }
  0xe7   :  { %648 = vst [vmem:[#allocation2 + $0xc8] sm:$0xff] %v584_v50 }
  0xe9   :  { %v501_v51 = vpop.f32.mrf.mxu2  ;;  %v541_v52 = vpop.f32.mrf.mxu3 }
  0xea   :  { %v600_v53 = vmax.f32 %v501_v51, 0.0  ;;  %v616_v54 = vmax.f32 %v541_v52, 0.0  ;;  %v424_v55 = vpop.f32.mrf.mxu0  ;;  %v464_v56 = vpop.f32.mrf.mxu1 }
  0xeb   :  { %v569_v57 = vmax.f32 %v424_v55, 0.0  ;;  %v585_v58 = vmax.f32 %v464_v56, 0.0 }
  0xec   :  { %664 = vst [vmem:[#allocation2 + $0x148] sm:$0xff] %v600_v53 }
  0xed   :  { %680 = vst [vmem:[#allocation2 + $0x1c8] sm:$0xff] %v616_v54 }
  0xee   :  { %633 = vst [vmem:[#allocation2 + $0x50] sm:$0xff] %v569_v57 }
  0xef   :  { %649 = vst [vmem:[#allocation2 + $0xd0] sm:$0xff] %v585_v58 }
  0xf1   :  { %v504_v59 = vpop.f32.mrf.mxu2  ;;  %v544_v60 = vpop.f32.mrf.mxu3 }
  0xf2   :  { %v601_v61 = vmax.f32 %v504_v59, 0.0  ;;  %v617_v62 = vmax.f32 %v544_v60, 0.0  ;;  %v426_v63 = vpop.f32.mrf.mxu0  ;;  %v466_v0 = vpop.f32.mrf.mxu1 }
  0xf3   :  { %v570_v1 = vmax.f32 %v426_v63, 0.0  ;;  %v586_v2 = vmax.f32 %v466_v0, 0.0 }
  0xf4   :  { %665 = vst [vmem:[#allocation2 + $0x150] sm:$0xff] %v601_v61 }
  0xf5   :  { %681 = vst [vmem:[#allocation2 + $0x1d0] sm:$0xff] %v617_v62 }
  0xf6   :  { %634 = vst [vmem:[#allocation2 + $0x58] sm:$0xff] %v570_v1 }
  0xf7   :  { %650 = vst [vmem:[#allocation2 + $0xd8] sm:$0xff] %v586_v2 }
  0xf9   :  { %v506_v3 = vpop.f32.mrf.mxu2  ;;  %v546_v4 = vpop.f32.mrf.mxu3 }
  0xfa   :  { %v602_v5 = vmax.f32 %v506_v3, 0.0  ;;  %v618_v6 = vmax.f32 %v546_v4, 0.0  ;;  %v429_v7 = vpop.f32.mrf.mxu0  ;;  %v469_v8 = vpop.f32.mrf.mxu1 }
  0xfb   :  { %v571_v9 = vmax.f32 %v429_v7, 0.0  ;;  %v587_v10 = vmax.f32 %v469_v8, 0.0 }
  0xfc   :  { %666 = vst [vmem:[#allocation2 + $0x158] sm:$0xff] %v602_v5 }
  0xfd   :  { %682 = vst [vmem:[#allocation2 + $0x1d8] sm:$0xff] %v618_v6 }
  0xfe   :  { %635 = vst [vmem:[#allocation2 + $0x60] sm:$0xff] %v571_v9 }
  0xff   :  { %651 = vst [vmem:[#allocation2 + $0xe0] sm:$0xff] %v587_v10 }
 0x101   :  { %v509_v11 = vpop.f32.mrf.mxu2  ;;  %v549_v12 = vpop.f32.mrf.mxu3 }
 0x102   :  { %v603_v13 = vmax.f32 %v509_v11, 0.0  ;;  %v619_v14 = vmax.f32 %v549_v12, 0.0  ;;  %v431_v15 = vpop.f32.mrf.mxu0  ;;  %v471_v16 = vpop.f32.mrf.mxu1 }
 0x103   :  { %v572_v17 = vmax.f32 %v431_v15, 0.0  ;;  %v588_v18 = vmax.f32 %v471_v16, 0.0 }
 0x104   :  { %667 = vst [vmem:[#allocation2 + $0x160] sm:$0xff] %v603_v13 }
 0x105   :  { %683 = vst [vmem:[#allocation2 + $0x1e0] sm:$0xff] %v619_v14 }
 0x106   :  { %636 = vst [vmem:[#allocation2 + $0x68] sm:$0xff] %v572_v17 }
 0x107   :  { %652 = vst [vmem:[#allocation2 + $0xe8] sm:$0xff] %v588_v18 }
 0x109   :  { %v511_v19 = vpop.f32.mrf.mxu2  ;;  %v551_v20 = vpop.f32.mrf.mxu3 }
 0x10a   :  { %v604_v21 = vmax.f32 %v511_v19, 0.0  ;;  %v620_v22 = vmax.f32 %v551_v20, 0.0  ;;  %v434_v23 = vpop.f32.mrf.mxu0  ;;  %v474_v24 = vpop.f32.mrf.mxu1 }
 0x10b   :  { %v573_v25 = vmax.f32 %v434_v23, 0.0  ;;  %v589_v26 = vmax.f32 %v474_v24, 0.0 }
 0x10c   :  { %668 = vst [vmem:[#allocation2 + $0x168] sm:$0xff] %v604_v21 }
 0x10d   :  { %684 = vst [vmem:[#allocation2 + $0x1e8] sm:$0xff] %v620_v22 }
 0x10e   :  { %637 = vst [vmem:[#allocation2 + $0x70] sm:$0xff] %v573_v25 }
 0x10f   :  { %653 = vst [vmem:[#allocation2 + $0xf0] sm:$0xff] %v589_v26 }
 0x111   :  { %v514_v27 = vpop.f32.mrf.mxu2  ;;  %v554_v28 = vpop.f32.mrf.mxu3 }
 0x112   :  { %v605_v29 = vmax.f32 %v514_v27, 0.0  ;;  %v621_v30 = vmax.f32 %v554_v28, 0.0  ;;  %v436_v31 = vpop.f32.mrf.mxu0  ;;  %v476_v32 = vpop.f32.mrf.mxu1 }
 0x113   :  { %v574_v33 = vmax.f32 %v436_v31, 0.0  ;;  %v590_v34 = vmax.f32 %v476_v32, 0.0 }
 0x114   :  { %669 = vst [vmem:[#allocation2 + $0x170] sm:$0xff] %v605_v29 }
 0x115   :  { %685 = vst [vmem:[#allocation2 + $0x1f0] sm:$0xff] %v621_v30 }
 0x116   :  { %638 = vst [vmem:[#allocation2 + $0x78] sm:$0xff] %v574_v33 }
 0x117   :  { %654 = vst [vmem:[#allocation2 + $0xf8] sm:$0xff] %v590_v34 }
 0x119   :  { %v516_v35 = vpop.f32.mrf.mxu2  ;;  %v556_v36 = vpop.f32.mrf.mxu3 }
 0x11a   :  { %v606_v37 = vmax.f32 %v516_v35, 0.0  ;;  %v622_v38 = vmax.f32 %v556_v36, 0.0 }
 0x11c   :  { %670 = vst [vmem:[#allocation2 + $0x178] sm:$0xff] %v606_v37 }
 0x11d   :  { %686 = vst [vmem:[#allocation2 + $0x1f8] sm:$0xff] %v622_v38 }
 0x11e   :  { %699 = dma.vmem_to_hbm [thread:$0]  %s692_s29, 8192, %s694_s3, [#allocation3], %s983_s4, %s983_s4, %s984_s5  }
 0x11f   :  { %980 = dma.done.wait [#allocation3], 8192  }
 0x120   :  { %981 = vsyncadd [#allocation3], 4294959104 }
 0x121   :  { %704 = vsyncpa [#allocation3], 1 }

</bundles_post_ra>
